<compile_context>
chip_gen: v7x
topology: tpu7x:2x2x1
jax: 0.10.0
libtpu: 0.0.40
codegen_flags: <defaults>
</compile_context>

<pallas_src>
import jax
import jax.numpy as jnp
from jax.experimental import pallas as pl
from jax.experimental.pallas import tpu as pltpu

INPUT_DIM = 80
HIDDEN_DIM = 128
LATENT_DIM = 64


def _cdiv(a, b):
    return (a + b - 1) // b


def _round_up(x, m):
    return ((x + m - 1) // m) * m


def _mlp_kernel(x_ref, w1_ref, b1_ref, w2_ref, b2_ref, w3_ref, b3_ref, o_ref):
    # Whole hot path (3 matmuls + bias + ReLU) fused and VMEM-resident per row tile.
    x = x_ref[...]                                        # (br, 80) f32
    h1 = jnp.dot(x, w1_ref[...],                          # f32 layer-1 (accuracy)
                 preferred_element_type=jnp.float32) + b1_ref[...]
    h1 = jnp.maximum(h1, 0.0)
    # Dropout(0.2): identity in eval mode.
    h2 = jnp.dot(h1.astype(jnp.bfloat16), w2_ref[...],
                 preferred_element_type=jnp.float32) + b2_ref[...]
    h2 = jnp.maximum(h2, 0.0)
    z = jnp.dot(h2.astype(jnp.bfloat16), w3_ref[...],
                preferred_element_type=jnp.float32) + b3_ref[...]
    o_ref[...] = z.astype(o_ref.dtype)                    # (br, 64) f32 store


def voice_encoder_forward(x, params, *, block_rows=2048):
    """x: (N, INPUT_DIM) float32 -> (N, LATENT_DIM) float32."""
    w1, b1, w2, b2, w3, b3 = params
    n, d = x.shape
    assert d == INPUT_DIM

    # One-time tiny weight/bias prep (x itself is fed to the kernel untouched).
    w1_f = w1.astype(jnp.float32)
    b1_f = b1.reshape(1, HIDDEN_DIM).astype(jnp.float32)
    w2_b = w2.astype(jnp.bfloat16)
    b2_f = b2.reshape(1, HIDDEN_DIM).astype(jnp.float32)
    w3_b = w3.astype(jnp.bfloat16)
    b3_f = b3.reshape(1, LATENT_DIM).astype(jnp.float32)

    # Balanced row tiling: big blocks (amortize per-step overhead), minimal tail waste,
    # and >=2 grid steps for large N so the "parallel" row axis can be split across
    # both TensorCores on v7x. The last block may be partial; Pallas masks it.
    nb = max(_cdiv(n, block_rows), 2 if n >= 1024 else 1)
    br = _round_up(_cdiv(n, nb), 8)
    nb = _cdiv(max(n, 1), br)

    def full_spec(arr):
        # Grid-invariant block: same (0, 0) index every step -> no per-step re-DMA.
        return pl.BlockSpec(arr.shape, lambda i: (0, 0))

    out = pl.pallas_call(
        _mlp_kernel,
        out_shape=jax.ShapeDtypeStruct((n, LATENT_DIM), jnp.float32),
        grid_spec=pltpu.PrefetchScalarGridSpec(
            num_scalar_prefetch=0,
            grid=(nb,),
            in_specs=[
                pl.BlockSpec((br, INPUT_DIM), lambda i: (i, 0)),
                full_spec(w1_f), full_spec(b1_f),
                full_spec(w2_b), full_spec(b2_f),
                full_spec(w3_b), full_spec(b3_f),
            ],
            out_specs=pl.BlockSpec((br, LATENT_DIM), lambda i: (i, 0)),
        ),
        compiler_params=pltpu.CompilerParams(
            dimension_semantics=("parallel",)),
    )(x, w1_f, b1_f, w2_b, b2_f, w3_b, b3_f)

    return out


def init_params(key):
    """Deterministic synthetic init mimicking nn.Linear's U(-1/sqrt(fan_in), ...)."""
    ks = jax.random.split(key, 6)

    def linear(kw, kb, fan_in, fan_out):
        bound = 1.0 / jnp.sqrt(fan_in)
        w = jax.random.uniform(kw, (fan_in, fan_out), jnp.float32, -bound, bound)
        b = jax.random.uniform(kb, (1, fan_out), jnp.float32, -bound, bound)
        return w, b

    w1, b1 = linear(ks[0], ks[1], INPUT_DIM, HIDDEN_DIM)
    w2, b2 = linear(ks[2], ks[3], HIDDEN_DIM, HIDDEN_DIM)
    w3, b3 = linear(ks[4], ks[5], HIDDEN_DIM, LATENT_DIM)
    return (w1, b1, w2, b2, w3, b3)


def reference_forward(x, params):
    w1, b1, w2, b2, w3, b3 = params
    h1 = jnp.maximum(x @ w1 + b1, 0.0)
    h2 = jnp.maximum(h1 @ w2 + b2, 0.0)
    return h2 @ w3 + b3


if __name__ == "__main__":
    key = jax.random.PRNGKey(0)
    k_param, k_x1, k_x2, k_x3 = jax.random.split(key, 4)

    params = init_params(k_param)

    # 8 mel-feature frames, each with 80 MFCC(+delta) coefficients.
    x_small = jax.random.normal(k_x1, (8, INPUT_DIM), jnp.float32)
    out_small = jax.block_until_ready(voice_encoder_forward(x_small, params))
    ref_small = reference_forward(x_small, params)
    assert out_small.shape == (8, LATENT_DIM)
    assert jnp.allclose(out_small, ref_small, atol=2e-2, rtol=2e-2), \
        "mismatch vs pure-JAX reference (small batch)"

    # Ragged batch: exercises the partial-block (OOB-masked) path, no wrapper pad/slice.
    x_ragged = jax.random.normal(k_x2, (37, INPUT_DIM), jnp.float32)
    out_ragged = jax.block_until_ready(voice_encoder_forward(x_ragged, params))
    ref_ragged = reference_forward(x_ragged, params)
    assert out_ragged.shape == (37, LATENT_DIM)
    assert jnp.allclose(out_ragged, ref_ragged, atol=2e-2, rtol=2e-2), \
        "mismatch vs pure-JAX reference (ragged batch)"

    # Larger ragged batch: exercises the multi-step grid (>=2 blocks) + partial tail.
    x_big = jax.random.normal(k_x3, (1500, INPUT_DIM), jnp.float32)
    out_big = jax.block_until_ready(voice_encoder_forward(x_big, params))
    ref_big = reference_forward(x_big, params)
    assert out_big.shape == (1500, LATENT_DIM)
    assert jnp.allclose(out_big, ref_big, atol=2e-2, rtol=2e-2), \
        "mismatch vs pure-JAX reference (multi-block batch)"

    print("KERNEL_OK")
</pallas_src>

<mosaic_0001>
module attributes {stable_mosaic.version = 11 : i64} {
  func.func @_mlp_kernel(%arg0: i32, %arg1: memref<8x80xf32, #tpu.memory_space<vmem>>, %arg2: memref<80x128xf32, #tpu.memory_space<vmem>>, %arg3: memref<1x128xf32, #tpu.memory_space<vmem>>, %arg4: memref<128x128xbf16, #tpu.memory_space<vmem>>, %arg5: memref<1x128xf32, #tpu.memory_space<vmem>>, %arg6: memref<128x64xbf16, #tpu.memory_space<vmem>>, %arg7: memref<1x64xf32, #tpu.memory_space<vmem>>, %arg8: memref<8x64xf32, #tpu.memory_space<vmem>>) attributes {dimension_semantics = [#tpu.dimension_semantics<parallel>], iteration_bounds = array<i64: 1>, scalar_prefetch = 0 : i64, scratch_operands = 0 : i64, tpu.core_type = #tpu.core_type<tc>, window_params = [{transform_indices = @transform_0, window_bounds = array<i64: 8, 80>}, {pipeline_mode = #tpu.pipeline_mode<synchronous>, transform_indices = @transform_1, window_bounds = array<i64: 80, 128>}, {pipeline_mode = #tpu.pipeline_mode<synchronous>, transform_indices = @transform_2, window_bounds = array<i64: 1, 128>}, {pipeline_mode = #tpu.pipeline_mode<synchronous>, transform_indices = @transform_3, window_bounds = array<i64: 128, 128>}, {pipeline_mode = #tpu.pipeline_mode<synchronous>, transform_indices = @transform_4, window_bounds = array<i64: 1, 128>}, {pipeline_mode = #tpu.pipeline_mode<synchronous>, transform_indices = @transform_5, window_bounds = array<i64: 128, 64>}, {pipeline_mode = #tpu.pipeline_mode<synchronous>, transform_indices = @transform_6, window_bounds = array<i64: 1, 64>}, {transform_indices = @transform_7, window_bounds = array<i64: 8, 64>}]} {
    %c0 = arith.constant 0 : index
    %c0_0 = arith.constant 0 : index
    %0 = vector.load %arg1[%c0, %c0_0] : memref<8x80xf32, #tpu.memory_space<vmem>>, vector<8x80xf32>
    %c0_1 = arith.constant 0 : index
    %c0_2 = arith.constant 0 : index
    %1 = vector.load %arg2[%c0_1, %c0_2] : memref<80x128xf32, #tpu.memory_space<vmem>>, vector<80x128xf32>
    %cst = arith.constant dense<0.000000e+00> : vector<8x128xf32>
    %2 = tpu.matmul %0, %1, %cst {dimension_numbers = #tpu.dot_dimension_numbers<[1], [0], [0], [1], [0, 0, 1, 1], [], []>} : vector<8x80xf32>, vector<80x128xf32>, vector<8x128xf32> -> vector<8x128xf32>
    %c0_3 = arith.constant 0 : index
    %c0_4 = arith.constant 0 : index
    %3 = vector.load %arg3[%c0_3, %c0_4] : memref<1x128xf32, #tpu.memory_space<vmem>>, vector<1x128xf32>
    %4 = vector.broadcast %3 : vector<1x128xf32> to vector<8x128xf32>
    %5 = arith.addf %2, %4 : vector<8x128xf32>
    %cst_5 = arith.constant 0.000000e+00 : f32
    %6 = vector.broadcast %cst_5 : f32 to vector<8x128xf32>
    %7 = arith.maximumf %5, %6 : vector<8x128xf32>
    %8 = arith.truncf %7 : vector<8x128xf32> to vector<8x128xbf16>
    %c0_6 = arith.constant 0 : index
    %c0_7 = arith.constant 0 : index
    %9 = vector.load %arg4[%c0_6, %c0_7] : memref<128x128xbf16, #tpu.memory_space<vmem>>, vector<128x128xbf16>
    %cst_8 = arith.constant dense<0.000000e+00> : vector<8x128xf32>
    %10 = tpu.matmul %8, %9, %cst_8 {dimension_numbers = #tpu.dot_dimension_numbers<[1], [0], [0], [1], [0, 0, 1, 1], [], []>} : vector<8x128xbf16>, vector<128x128xbf16>, vector<8x128xf32> -> vector<8x128xf32>
    %c0_9 = arith.constant 0 : index
    %c0_10 = arith.constant 0 : index
    %11 = vector.load %arg5[%c0_9, %c0_10] : memref<1x128xf32, #tpu.memory_space<vmem>>, vector<1x128xf32>
    %12 = vector.broadcast %11 : vector<1x128xf32> to vector<8x128xf32>
    %13 = arith.addf %10, %12 : vector<8x128xf32>
    %cst_11 = arith.constant 0.000000e+00 : f32
    %14 = vector.broadcast %cst_11 : f32 to vector<8x128xf32>
    %15 = arith.maximumf %13, %14 : vector<8x128xf32>
    %16 = arith.truncf %15 : vector<8x128xf32> to vector<8x128xbf16>
    %c0_12 = arith.constant 0 : index
    %c0_13 = arith.constant 0 : index
    %17 = vector.load %arg6[%c0_12, %c0_13] : memref<128x64xbf16, #tpu.memory_space<vmem>>, vector<128x64xbf16>
    %cst_14 = arith.constant dense<0.000000e+00> : vector<8x64xf32>
    %18 = tpu.matmul %16, %17, %cst_14 {dimension_numbers = #tpu.dot_dimension_numbers<[1], [0], [0], [1], [0, 0, 1, 1], [], []>} : vector<8x128xbf16>, vector<128x64xbf16>, vector<8x64xf32> -> vector<8x64xf32>
    %c0_15 = arith.constant 0 : index
    %c0_16 = arith.constant 0 : index
    %19 = vector.load %arg7[%c0_15, %c0_16] : memref<1x64xf32, #tpu.memory_space<vmem>>, vector<1x64xf32>
    %20 = vector.broadcast %19 : vector<1x64xf32> to vector<8x64xf32>
    %21 = arith.addf %18, %20 : vector<8x64xf32>
    %c0_17 = arith.constant 0 : index
    %c0_18 = arith.constant 0 : index
    %22 = vector.load %arg8[%c0_17, %c0_18] : memref<8x64xf32, #tpu.memory_space<vmem>>, vector<8x64xf32>
    tpu.vector_store %arg8[%c0_17, %c0_18], %21 {strides = array<i32>} : memref<8x64xf32, #tpu.memory_space<vmem>>, vector<8x64xf32>,
    return
  }
  func.func @transform_0(%arg0: i32) -> (i32, i32) {
    %c0_i32 = arith.constant 0 : i32
    %c0_i32_0 = arith.constant 0 : i32
    return %arg0, %c0_i32 : i32, i32
  }
  func.func @transform_1(%arg0: i32) -> (i32, i32) {
    %c0_i32 = arith.constant 0 : i32
    %c0_i32_0 = arith.constant 0 : i32
    %c0_i32_1 = arith.constant 0 : i32
    return %c0_i32, %c0_i32_0 : i32, i32
  }
  func.func @transform_2(%arg0: i32) -> (i32, i32) {
    %c0_i32 = arith.constant 0 : i32
    %c0_i32_0 = arith.constant 0 : i32
    %c0_i32_1 = arith.constant 0 : i32
    return %c0_i32, %c0_i32_0 : i32, i32
  }
  func.func @transform_3(%arg0: i32) -> (i32, i32) {
    %c0_i32 = arith.constant 0 : i32
    %c0_i32_0 = arith.constant 0 : i32
    %c0_i32_1 = arith.constant 0 : i32
    return %c0_i32, %c0_i32_0 : i32, i32
  }
  func.func @transform_4(%arg0: i32) -> (i32, i32) {
    %c0_i32 = arith.constant 0 : i32
    %c0_i32_0 = arith.constant 0 : i32
    %c0_i32_1 = arith.constant 0 : i32
    return %c0_i32, %c0_i32_0 : i32, i32
  }
  func.func @transform_5(%arg0: i32) -> (i32, i32) {
    %c0_i32 = arith.constant 0 : i32
    %c0_i32_0 = arith.constant 0 : i32
    %c0_i32_1 = arith.constant 0 : i32
    return %c0_i32, %c0_i32_0 : i32, i32
  }
  func.func @transform_6(%arg0: i32) -> (i32, i32) {
    %c0_i32 = arith.constant 0 : i32
    %c0_i32_0 = arith.constant 0 : i32
    %c0_i32_1 = arith.constant 0 : i32
    return %c0_i32, %c0_i32_0 : i32, i32
  }
  func.func @transform_7(%arg0: i32) -> (i32, i32) {
    %c0_i32 = arith.constant 0 : i32
    %c0_i32_0 = arith.constant 0 : i32
    return %arg0, %c0_i32 : i32, i32
  }
}

</mosaic_0001>

<bundles_post_ra>
// kernel: tpu_custom_call.1
= control target key start
LH: loop header
LB: loop body
LE: loop exit
PB: predicated region body
PF: predicated region fallthrough
CT: control target
= control target key end

     0   :  { %12 = vsyncpa [#allocation3], 0  ;;  %s734_s0 = inlined_call_operand.vmem [shape: f32[8,80], index: 0, kind: input, shape index: {}]   ;;  %s735_s1 = inlined_call_operand.vmem [shape: f32[80,128], index: 1, kind: input, shape index: {}]   ;;  %s736_s2 = inlined_call_operand.vmem [shape: f32[1,128], index: 2, kind: input, shape index: {}]   ;;  %s737_s3 = inlined_call_operand.hbm [shape: bf16[128,128], index: 3, kind: input, shape index: {}]   ;;  %s738_s4 = inlined_call_operand.vmem [shape: f32[1,128], index: 4, kind: input, shape index: {}]   ;;  %s739_s5 = inlined_call_operand.vmem [shape: bf16[128,64], index: 5, kind: input, shape index: {}]   ;;  %s740_s6 = inlined_call_operand.vmem [shape: f32[1,64], index: 6, kind: input, shape index: {}]   ;;  %s741_s7 = inlined_call_operand.hbm [shape: f32[8,64], index: 7, kind: output, shape index: {}]  }
   0x1   :  { %13 = vsyncpa [#allocation4], 0  ;;  %s575_s24 = smov [#allocation2]   ;;  %s527_s28 = scalar_lea.hbm %s737_s3, 1024 }
   0x2   :  { %s25_s25 = sshll.u32 %s575_s24, 4  ;;  %p528_p0 = scmp.ne.s32.totalorder %s737_s3, %s527_s28  ;;  %s26_s25 = int_to_ptr.vmem [resolvable:$true] %s25_s25 }
   0x3   :  { %p531_p1 = scmp.lt.u32.totalorder %s527_s28, %s737_s3 }
   0x5   :  { %p533_p2 = pnand %p531_p1, %p528_p0 }
   0x7   :  { %536 = shalt.err (!%p533_p2)
}
   0x8   :  { %s537_s10 = scalar_lea.vmem %s26_s25, 1024  ;;  %p542_p4 = scmp.lt.s32.totalorder %s26_s25, %s26_s25 }
   0x9   :  { %p538_p3 = scmp.ne.s32.totalorder %s26_s25, %s537_s10  ;;  %p543_p5 = scmp.lt.s32.totalorder %s537_s10, %s537_s10 }
   0xb   :  { %p544_p6 = por %p543_p5, %p542_p4 }
   0xd   :  { %p545_p7 = pnand %p544_p6, %p538_p3 }
   0xf   :  { %548 = shalt.err (!%p545_p7)
}
  0x10   :  { %s576_s11 = smov 64   ;;  %s577_s12 = smov 4  }
  0x11   :  { %31 = dma.hbm_to_vmem [thread:$0]  %s737_s3, 1024, %s26_s25, [#allocation3], %s576_s11, %s576_s11, %s577_s12  }
  0x12   :  { %571 = dma.done.wait [#allocation3], 1024  }
  0x13   :  { %572 = vsyncadd [#allocation3], 4294966272  ;;  %v578_v0 = vmov 0.0|0.0   ;;  %vm579_vm0 = vmmov 0   ;;  %v580_v1 = vmov 0.0   ;;  %v43_v2 = vld [vmem:[%s735_s1] sm:$0xff] }
  0x14   :  { %489 = vmatprep.subr.bf16.mxu0 %v578_v0  ;;  %446 = vmatprep.mubr.msk.f32.mxu0 %vm579_vm0, %v580_v1  ;;  %v44_v3 = vld [vmem:[%s735_s1 + $0x8] sm:$0xff]  ;;  %v45_v4 = vld [vmem:[%s735_s1 + $0x10] sm:$0xff]  ;;  %v46_v6 = vld [vmem:[%s735_s1 + $0x18] sm:$0xff]  ;;  %vm60_vm1 = vcmask 654336   ;;  %s581_s8 = smov [#allocation5]   ;;  %vm360_vm2 = vcmask 523264  }
  0x15   :  { %449 = vmatprep.subr.bf16.mxu1 %v580_v1  ;;  %465 = vmatprep.mubr.msk.bf16.mxu1 %vm579_vm0, %v580_v1  ;;  %v490_v5 = vpack.c.bf16 %v44_v3, %v43_v2  ;;  %v493_v7 = vpack.c.bf16 %v46_v6, %v45_v4  ;;  %v47_v8 = vld [vmem:[%s735_s1 + $0x20] sm:$0xff]  ;;  %v48_v9 = vld [vmem:[%s735_s1 + $0x28] sm:$0xff]  ;;  %v49_v13 = vld [vmem:[%s735_s1 + $0x30] sm:$0xff]  ;;  %s368_s9 = sshll.u32 %s581_s8, 4  ;;  %s369_s9 = int_to_ptr.vmem [resolvable:$true] %s368_s9 }
  0x16   :  { %v511_v10 = vld [vmem:[#allocation2] sm:$0xff]   ;;  %v512_v11 = vld [vmem:[#allocation2 + $0x8] sm:$0xff]   ;;  %v496_v12 = vpack.c.bf16 %v48_v9, %v47_v8  ;;  %v50_v14 = vld [vmem:[%s735_s1 + $0x38] sm:$0xff]  ;;  %p554_p9 = scmp.lt.s32.totalorder %s369_s9, %s369_s9 }
  0x17   :  { %491 = vmatpush3.bf16.msra.mxu0 %v490_v5  ;;  %450 = vmatpush3.bf16.msra.mxu1 %v511_v10  ;;  %v513_v15 = vld [vmem:[#allocation2 + $0x10] sm:$0xff]   ;;  %v51_v16 = vld [vmem:[%s735_s1 + $0x40] sm:$0xff]  ;;  %v52_v17 = vld [vmem:[%s735_s1 + $0x48] sm:$0xff]  ;;  %v499_v18 = vpack.c.bf16 %v50_v14, %v49_v13 }
  0x18   :  { %492 = vmatprep.subr.bf16.mxu0 %v578_v0  ;;  %451 = vmatprep.subr.bf16.mxu1 %v580_v1  ;;  %v514_v19 = vld [vmem:[#allocation2 + $0x18] sm:$0xff]   ;;  %v502_v20 = vpack.c.bf16 %v52_v17, %v51_v16  ;;  %v515_v21 = vld [vmem:[#allocation2 + $0x20] sm:$0xff]   ;;  %v516_v23 = vld [vmem:[#allocation2 + $0x28] sm:$0xff]  }
  0x19   :  { %v42_v22 = vld [vmem:[%s734_s0] sm:$0xff]  ;;  %v517_v24 = vld [vmem:[#allocation2 + $0x30] sm:$0xff]   ;;  %v518_v25 = vld [vmem:[#allocation2 + $0x38] sm:$0xff]  }
  0x1a   :  { %v519_v26 = vld [vmem:[%s739_s5] sm:$0xff]   ;;  %v520_v27 = vld [vmem:[%s739_s5 + $0x8] sm:$0xff]   ;;  %v521_v28 = vld [vmem:[%s739_s5 + $0x10] sm:$0xff]  }
  0x1b   :  { %494 = vmatpush3.bf16.msra.mxu0 %v493_v7  ;;  %452 = vmatpush3.bf16.msra.mxu1 %v512_v11  ;;  %v522_v29 = vld [vmem:[%s739_s5 + $0x18] sm:$0xff]   ;;  %v523_v30 = vld [vmem:[%s739_s5 + $0x20] sm:$0xff]   ;;  %v524_v31 = vld [vmem:[%s739_s5 + $0x28] sm:$0xff]  }
  0x1c   :  { %495 = vmatprep.subr.bf16.mxu0 %v578_v0  ;;  %453 = vmatprep.subr.bf16.mxu1 %v580_v1  ;;  %v377_v32 = vld [vmem:[%s736_s2] ss:$0 sm:$0xff]  ;;  %v525_v38 = vld [vmem:[%s739_s5 + $0x30] sm:$0xff]   ;;  %v526_v39 = vld [vmem:[%s739_s5 + $0x38] sm:$0xff]  }
  0x1d   :  { %v379_v40 = vld [vmem:[%s738_s4] ss:$0 sm:$0xff]  ;;  %s549_s4 = scalar_lea.vmem %s369_s9, 128 }
  0x1e   :  { %v388_v48 = vld [vmem:[%s740_s6] ss:$0 sm:$0xff]  ;;  %p550_p8 = scmp.ne.s32.totalorder %s369_s9, %s549_s4  ;;  %p555_p10 = scmp.lt.s32.totalorder %s549_s4, %s549_s4 }
  0x1f   :  { %497 = vmatpush3.bf16.msra.mxu0 %v496_v12  ;;  %454 = vmatpush3.bf16.msra.mxu1 %v513_v15 }
  0x20   :  { %498 = vmatprep.subr.bf16.mxu0 %v578_v0  ;;  %455 = vmatprep.subr.bf16.mxu1 %v580_v1  ;;  %p556_p11 = por %p555_p10, %p554_p9 }
  0x22   :  { %p557_p12 = pnand %p556_p11, %p550_p8 }
  0x23   :  { %500 = vmatpush3.bf16.msra.mxu0 %v499_v18  ;;  %456 = vmatpush3.bf16.msra.mxu1 %v514_v19 }
  0x24   :  { %501 = vmatprep.subr.bf16.mxu0 %v578_v0  ;;  %457 = vmatprep.subr.bf16.mxu1 %v580_v1 }
  0x27   :  { %503 = vmatpush3.bf16.msra.mxu0 %v502_v20  ;;  %458 = vmatpush3.bf16.msra.mxu1 %v515_v21 }
  0x28   :  { %469 = vmatprep.subr.bf16.mxu0 %v580_v1  ;;  %459 = vmatprep.subr.bf16.mxu1 %v580_v1 }
  0x2a   :  { %447 = vmatmul.mubr.msk.f32.vlgmr.msra.gmra.mrb[0].mxu0 %vm60_vm1, %v42_v22 }
  0x2b   :  { %485 = vmatprep.mubr.msk.bf16.mxu0 %vm579_vm0, %v580_v1  ;;  %460 = vmatpush3.bf16.msra.mxu1 %v516_v23 }
  0x2c   :  { %461 = vmatprep.subr.bf16.mxu1 %v580_v1  ;;  %470 = vmatpush3.bf16.msra.mxu0 %v519_v26 }
  0x2d   :  { %471 = vmatprep.subr.bf16.mxu0 %v580_v1 }
  0x2f   :  { %462 = vmatpush3.bf16.msra.mxu1 %v517_v24 }
  0x30   :  { %463 = vmatprep.subr.bf16.mxu1 %v580_v1  ;;  %472 = vmatpush3.bf16.msra.mxu0 %v520_v27 }
  0x31   :  { %473 = vmatprep.subr.bf16.mxu0 %v580_v1 }
  0x33   :  { %464 = vmatpush3.bf16.msra.mxu1 %v518_v25 }
  0x34   :  { %474 = vmatpush3.bf16.msra.mxu0 %v521_v28 }
  0x35   :  { %475 = vmatprep.subr.bf16.mxu0 %v580_v1 }
  0x38   :  { %476 = vmatpush3.bf16.msra.mxu0 %v522_v29 }
  0x39   :  { %477 = vmatprep.subr.bf16.mxu0 %v580_v1 }
  0x3c   :  { %478 = vmatpush3.bf16.msra.mxu0 %v523_v30 }
  0x3d   :  { %479 = vmatprep.subr.bf16.mxu0 %v580_v1 }
  0x40   :  { %480 = vmatpush3.bf16.msra.mxu0 %v524_v31 }
  0x41   :  { %481 = vmatprep.subr.bf16.mxu0 %v580_v1 }
  0x44   :  { %482 = vmatpush3.bf16.msra.mxu0 %v525_v38 }
  0x45   :  { %483 = vmatprep.subr.bf16.mxu0 %v580_v1 }
  0x48   :  { %484 = vmatpush3.bf16.msra.mxu0 %v526_v39 }
  0xfd   :  { %v130_v33 = vpop.f32.mrb[0].mxu0 }
  0xfe   :  { %v131_v34 = vadd.f32 %v377_v32, %v130_v33  ;;  %v448_v35 = vpop.f32.mrb[1].mxu0 }
 0x100   :  { %v134_v36 = vmax.f32 %v131_v34, 0.0 }
 0x102   :  { %v135_v37 = vpack.c.bf16 %v134_v36, %v134_v36 }
 0x104   :  { %466 = vmatmul.mubr.bf16.vlgmr.msra.gmra.mrb[0].mxu1 %v135_v37 }
 0x1d7   :  { %v241_v41 = vpop.f32.mrb[0].mxu1 }
 0x1d8   :  { %v242_v42 = vadd.f32 %v379_v40, %v241_v41  ;;  %v467_v43 = vpop.f32.mrb[1].mxu1 }
 0x1d9   :  { %v244_v44 = vpop.f32.mrb[2].mxu1 }
 0x1da   :  { %v247_v45 = vmax.f32 %v242_v42, 0.0  ;;  %v468_v46 = vpop.f32.mrb[3].mxu1 }
 0x1dc   :  { %v248_v47 = vpack.c.bf16 %v247_v45, %v247_v45 }
 0x1de   :  { %486 = vmatmul.mubr.bf16.vlgmr.msra.gmra.mrb[4].mxu0 %v248_v47 }
 0x2b1   :  { %v354_v49 = vpop.f32.mrb[4].mxu0 }
 0x2b2   :  { %v355_v50 = vadd.f32 %v388_v48, %v354_v49  ;;  %v487_v51 = vpop.f32.mrb[5].mxu0 }
 0x2b3   :  { %v357_v52 = vpop.f32.mrb[6].mxu0 }
 0x2b4   :  { %v488_v53 = vpop.f32.mrb[7].mxu0  ;;  %361 = vst.msk [vmem:[#allocation5] sm:$0xff] %vm360_vm2, %v355_v50 }
 0x2b5   :  { %560 = shalt.err (!%p557_p12)
}
 0x2b6   :  { %s561_s6 = scalar_lea.hbm %s741_s7, 128 }
 0x2b7   :  { %p562_p13 = scmp.ne.s32.totalorder %s741_s7, %s561_s6  ;;  %p565_p0 = scmp.lt.u32.totalorder %s561_s6, %s741_s7 }
 0x2b9   :  { %p567_p1 = pnand %p565_p0, %p562_p13 }
 0x2bb   :  { %570 = shalt.err (!%p567_p1)
}
 0x2bc   :  { %371 = dma.vmem_to_hbm [thread:$0]  %s369_s9, 128, %s741_s7, [#allocation4]  }
 0x2bd   :  { %573 = dma.done.wait [#allocation4], 128  }
 0x2be   :  { %574 = vsyncadd [#allocation4], 4294967168 }
 0x2bf   :  { %375 = vsyncpa [#allocation3], 1 }
 0x2c0   :  { %376 = vsyncpa [#allocation4], 1 }

</bundles_post_ra>
